<compile_context>
chip_gen: v5e
topology: v5e:2x2
jax: 0.10.0
libtpu: 0.0.40
codegen_flags: <defaults>
</compile_context>

<pallas_src>
import functools

import jax
import jax.numpy as jnp
from jax.experimental import pallas as pl
from jax.experimental.pallas import tpu as pltpu

DEGREE = 3
LANE = 128
SUBLANE_F32 = 8
DEFAULT_TILE_ROWS = 4096  # 4096 x 128 x 4B = 2 MiB per stream per buffer (f32)


def _poly_kernel(wr_ref, wi_ref, real_ref, imag_ref, out_r_ref, out_i_ref, *,
                 degree):
  # Upcast in-kernel (after DMA) so sub-f32 inputs only move narrow bytes.
  x = real_ref[...].astype(jnp.float32)
  y = imag_ref[...].astype(jnp.float32)

  # d = 0 peeled: terms_r = 1, terms_i = 0  ->  out_r = wr[0], out_i = wi[0].
  out_r = jnp.full_like(x, wr_ref[0])
  out_i = jnp.full_like(x, wi_ref[0])

  if degree > 1:
    # d = 1 peeled: terms_r = x, terms_i = y.
    out_r = out_r + (wr_ref[1] * x - wi_ref[1] * y)
    out_i = out_i + (wr_ref[1] * y + wi_ref[1] * x)

    # Running-power / parity recurrence for d >= 2:
    #   terms_r(d) = x * terms_r(d-1) + (y^d if d even else 0)
    #   terms_i(d) = x * terms_i(d-1) + (y^d if d odd  else 0)
    tr = x
    ti = y
    y_pow = y
    # degree is small and static -> fully unrolled elementwise VPU code.
    for d in range(2, degree):
      y_pow = y_pow * y
      if d % 2 == 0:
        tr = x * tr + y_pow
        ti = x * ti
      else:
        tr = x * tr
        ti = x * ti + y_pow
      # SMEM-scalar * vector: Mosaic lowers without materializing splat vregs.
      out_r = out_r + (wr_ref[d] * tr - wi_ref[d] * ti)
      out_i = out_i + (wr_ref[d] * ti + wi_ref[d] * tr)

  out_r_ref[...] = out_r.astype(out_r_ref.dtype)
  out_i_ref[...] = out_i.astype(out_i_ref.dtype)


def _round_up(x, m):
  return ((x + m - 1) // m) * m


def _dtype_sublane(dtype):
  # 8 rows for 32-bit, 16 for 16-bit, 32 for 8-bit dtypes (packing minimum).
  itemsize = jnp.dtype(dtype).itemsize
  return (SUBLANE_F32 * 4) // itemsize


def _pick_tile_rows(rows, preferred, sublane):
  if rows <= sublane:
    # One block equal to the full (tiny) array; no masking needed.
    return rows
  preferred = max(sublane, _round_up(preferred, sublane))
  # Target >= 4 grid steps (>= 2 per v7x TensorCore) so both cores still
  # double-buffer their DMAs.
  quarter = max(sublane, _round_up(pl.cdiv(rows, 4), sublane))
  return min(preferred, quarter)


def _vmem_limit_bytes(tile, itemsize):
  # 4 streams (2 in, 2 out) x 2 pipeline buffers per stream, plus headroom.
  budget = 4 * 2 * tile * LANE * itemsize
  try:
    cap = int(pltpu.get_tpu_info().vmem_capacity_bytes)
  except Exception:  # fall back to the most restrictive generation (v7x)
    cap = 64 * 1024 * 1024
  # Leave ~25% of physical VMEM for compiler scratch / intermediates.
  return int(min(max(2 * budget, 16 * 1024 * 1024), int(cap * 0.75)))


def complex_polynomial(real, imag, weights_real, weights_imag,
                       degree=DEGREE, tile_rows=DEFAULT_TILE_ROWS):
  assert real.shape == imag.shape
  orig_shape = real.shape
  out_dtype = real.dtype
  total = real.size
  itemsize = jnp.dtype(out_dtype).itemsize
  sublane = _dtype_sublane(out_dtype)

  rows = pl.cdiv(total, LANE)
  tile = _pick_tile_rows(rows, tile_rows, sublane)
  grid_steps = pl.cdiv(rows, tile)

  flat_r = real.reshape(-1)
  flat_i = imag.reshape(-1)
  lane_pad = rows * LANE - total
  if lane_pad:
    # Pad only to the next multiple of 128 lanes (minimum needed to form a
    # lane-dense 2-D view). Partial blocks along the row dimension are handled
    # by Pallas write-masking, so no padding to the tile boundary is needed.
    flat_r = jnp.pad(flat_r, (0, lane_pad))
    flat_i = jnp.pad(flat_i, (0, lane_pad))
  r2 = flat_r.reshape(rows, LANE)
  i2 = flat_i.reshape(rows, LANE)

  kernel = functools.partial(_poly_kernel, degree=degree)

  vmem_limit = _vmem_limit_bytes(tile, itemsize)
  bytes_accessed = 4 * rows * LANE * itemsize          # 2 reads + 2 writes
  flops = rows * LANE * 8 * max(degree, 1)             # rough elementwise count

  block = pl.BlockSpec((tile, LANE), lambda i: (i, 0))

  out_r, out_i = pl.pallas_call(
      kernel,
      out_shape=(
          jax.ShapeDtypeStruct((rows, LANE), out_dtype),
          jax.ShapeDtypeStruct((rows, LANE), out_dtype),
      ),
      grid=(grid_steps,),
      in_specs=[
          pl.BlockSpec(memory_space=pltpu.SMEM),  # weights_real (degree,)
          pl.BlockSpec(memory_space=pltpu.SMEM),  # weights_imag (degree,)
          block,
          block,
      ],
      out_specs=(block, block),
      compiler_params=pltpu.CompilerParams(
          dimension_semantics=("parallel",),
          vmem_limit_bytes=vmem_limit),
      cost_estimate=pl.CostEstimate(
          flops=flops, transcendentals=0, bytes_accessed=bytes_accessed),
  )(weights_real, weights_imag, r2, i2)

  if lane_pad:
    out_r = out_r.reshape(-1)[:total].reshape(orig_shape)
    out_i = out_i.reshape(-1)[:total].reshape(orig_shape)
  else:
    out_r = out_r.reshape(orig_shape)
    out_i = out_i.reshape(orig_shape)
  return out_r, out_i


def _reference(real, imag, wr, wi, degree=DEGREE):
  out_r = jnp.zeros_like(real)
  out_i = jnp.zeros_like(imag)
  for d in range(degree):
    tr = jnp.zeros_like(real)
    ti = jnp.zeros_like(imag)
    for k in range(d + 1):
      term = (real ** (d - k)) * (imag ** k)
      if k % 2 == 0:
        tr = tr + term
      else:
        ti = ti + term
    out_r = out_r + wr[d] * tr - wi[d] * ti
    out_i = out_i + wr[d] * ti + wi[d] * tr
  return out_r, out_i


if __name__ == "__main__":
  key = jax.random.PRNGKey(0)
  k1, k2, k3, k4, k5, k6 = jax.random.split(key, 6)

  # Deterministic "parameters" (stand-in for torch.randn(degree) init).
  weights_real = jax.random.normal(k1, (DEGREE,), dtype=jnp.float32)
  weights_imag = jax.random.normal(k2, (DEGREE,), dtype=jnp.float32)

  # Small NCHW-shaped elementwise inputs.
  real = jax.random.normal(k3, (2, 4, 16, 16), dtype=jnp.float32)
  imag = jax.random.normal(k4, (2, 4, 16, 16), dtype=jnp.float32)

  out_r, out_i = complex_polynomial(real, imag, weights_real, weights_imag)
  out_r, out_i = jax.block_until_ready((out_r, out_i))

  ref_r, ref_i = _reference(real, imag, weights_real, weights_imag)
  assert out_r.shape == real.shape and out_i.shape == imag.shape
  assert jnp.allclose(out_r, ref_r, atol=1e-5, rtol=1e-5)
  assert jnp.allclose(out_i, ref_i, atol=1e-5, rtol=1e-5)

  # Ragged-size sanity check (exercises the minimal lane-padding path).
  real_rag = jax.random.normal(k5, (2, 3, 5, 7), dtype=jnp.float32)
  imag_rag = jax.random.normal(k6, (2, 3, 5, 7), dtype=jnp.float32)
  rr, ri = complex_polynomial(real_rag, imag_rag, weights_real, weights_imag)
  rr, ri = jax.block_until_ready((rr, ri))
  ref_rr, ref_ri = _reference(real_rag, imag_rag, weights_real, weights_imag)
  assert rr.shape == real_rag.shape and ri.shape == imag_rag.shape
  assert jnp.allclose(rr, ref_rr, atol=1e-5, rtol=1e-5)
  assert jnp.allclose(ri, ref_ri, atol=1e-5, rtol=1e-5)

  print("KERNEL_OK")
</pallas_src>

<mosaic_0001>
module attributes {stable_mosaic.version = 11 : i64} {
  func.func @_poly_kernel(%arg0: i32, %arg1: memref<3xf32, #tpu.memory_space<smem>>, %arg2: memref<3xf32, #tpu.memory_space<smem>>, %arg3: memref<8x128xf32, #tpu.memory_space<vmem>>, %arg4: memref<8x128xf32, #tpu.memory_space<vmem>>, %arg5: memref<8x128xf32, #tpu.memory_space<vmem>>, %arg6: memref<8x128xf32, #tpu.memory_space<vmem>>) attributes {dimension_semantics = [#tpu.dimension_semantics<parallel>], iteration_bounds = array<i64: 2>, scalar_prefetch = 0 : i64, scratch_operands = 0 : i64, tpu.core_type = #tpu.core_type<tc>, window_params = [{transform_indices = @transform_0, window_bounds = array<i64: 3>}, {transform_indices = @transform_1, window_bounds = array<i64: 3>}, {transform_indices = @transform_2, window_bounds = array<i64: 8, 128>}, {transform_indices = @transform_3, window_bounds = array<i64: 8, 128>}, {transform_indices = @transform_4, window_bounds = array<i64: 8, 128>}, {transform_indices = @transform_5, window_bounds = array<i64: 8, 128>}]} {
    %c0 = arith.constant 0 : index
    %c0_0 = arith.constant 0 : index
    %0 = vector.load %arg3[%c0, %c0_0] : memref<8x128xf32, #tpu.memory_space<vmem>>, vector<8x128xf32>
    %c0_1 = arith.constant 0 : index
    %c0_2 = arith.constant 0 : index
    %1 = vector.load %arg4[%c0_1, %c0_2] : memref<8x128xf32, #tpu.memory_space<vmem>>, vector<8x128xf32>
    %c0_3 = arith.constant 0 : index
    %2 = memref.load %arg1[%c0_3] : memref<3xf32, #tpu.memory_space<smem>>
    %3 = vector.broadcast %2 : f32 to vector<8x128xf32>
    %c0_4 = arith.constant 0 : index
    %4 = memref.load %arg2[%c0_4] : memref<3xf32, #tpu.memory_space<smem>>
    %5 = vector.broadcast %4 : f32 to vector<8x128xf32>
    %c1 = arith.constant 1 : index
    %6 = memref.load %arg1[%c1] : memref<3xf32, #tpu.memory_space<smem>>
    %7 = vector.broadcast %6 : f32 to vector<8x128xf32>
    %8 = arith.mulf %7, %0 : vector<8x128xf32>
    %c1_5 = arith.constant 1 : index
    %9 = memref.load %arg2[%c1_5] : memref<3xf32, #tpu.memory_space<smem>>
    %10 = vector.broadcast %9 : f32 to vector<8x128xf32>
    %11 = arith.mulf %10, %1 : vector<8x128xf32>
    %12 = arith.subf %8, %11 : vector<8x128xf32>
    %13 = arith.addf %3, %12 : vector<8x128xf32>
    %c1_6 = arith.constant 1 : index
    %14 = memref.load %arg1[%c1_6] : memref<3xf32, #tpu.memory_space<smem>>
    %15 = vector.broadcast %14 : f32 to vector<8x128xf32>
    %16 = arith.mulf %15, %1 : vector<8x128xf32>
    %c1_7 = arith.constant 1 : index
    %17 = memref.load %arg2[%c1_7] : memref<3xf32, #tpu.memory_space<smem>>
    %18 = vector.broadcast %17 : f32 to vector<8x128xf32>
    %19 = arith.mulf %18, %0 : vector<8x128xf32>
    %20 = arith.addf %16, %19 : vector<8x128xf32>
    %21 = arith.addf %5, %20 : vector<8x128xf32>
    %22 = arith.mulf %1, %1 : vector<8x128xf32>
    %23 = arith.mulf %0, %0 : vector<8x128xf32>
    %24 = arith.addf %23, %22 : vector<8x128xf32>
    %25 = arith.mulf %0, %1 : vector<8x128xf32>
    %c2 = arith.constant 2 : index
    %26 = memref.load %arg1[%c2] : memref<3xf32, #tpu.memory_space<smem>>
    %27 = vector.broadcast %26 : f32 to vector<8x128xf32>
    %28 = arith.mulf %27, %24 : vector<8x128xf32>
    %c2_8 = arith.constant 2 : index
    %29 = memref.load %arg2[%c2_8] : memref<3xf32, #tpu.memory_space<smem>>
    %30 = vector.broadcast %29 : f32 to vector<8x128xf32>
    %31 = arith.mulf %30, %25 : vector<8x128xf32>
    %32 = arith.subf %28, %31 : vector<8x128xf32>
    %33 = arith.addf %13, %32 : vector<8x128xf32>
    %c2_9 = arith.constant 2 : index
    %34 = memref.load %arg1[%c2_9] : memref<3xf32, #tpu.memory_space<smem>>
    %35 = vector.broadcast %34 : f32 to vector<8x128xf32>
    %36 = arith.mulf %35, %25 : vector<8x128xf32>
    %c2_10 = arith.constant 2 : index
    %37 = memref.load %arg2[%c2_10] : memref<3xf32, #tpu.memory_space<smem>>
    %38 = vector.broadcast %37 : f32 to vector<8x128xf32>
    %39 = arith.mulf %38, %24 : vector<8x128xf32>
    %40 = arith.addf %36, %39 : vector<8x128xf32>
    %41 = arith.addf %21, %40 : vector<8x128xf32>
    %c0_11 = arith.constant 0 : index
    %c0_12 = arith.constant 0 : index
    %42 = vector.load %arg5[%c0_11, %c0_12] : memref<8x128xf32, #tpu.memory_space<vmem>>, vector<8x128xf32>
    tpu.vector_store %arg5[%c0_11, %c0_12], %33 {strides = array<i32>} : memref<8x128xf32, #tpu.memory_space<vmem>>, vector<8x128xf32>,
    %c0_13 = arith.constant 0 : index
    %c0_14 = arith.constant 0 : index
    %43 = vector.load %arg6[%c0_13, %c0_14] : memref<8x128xf32, #tpu.memory_space<vmem>>, vector<8x128xf32>
    tpu.vector_store %arg6[%c0_13, %c0_14], %41 {strides = array<i32>} : memref<8x128xf32, #tpu.memory_space<vmem>>, vector<8x128xf32>,
    return
  }
  func.func @transform_0(%arg0: i32) -> i32 {
    %c0_i32 = arith.constant 0 : i32
    %c0_i32_0 = arith.constant 0 : i32
    return %c0_i32 : i32
  }
  func.func @transform_1(%arg0: i32) -> i32 {
    %c0_i32 = arith.constant 0 : i32
    %c0_i32_0 = arith.constant 0 : i32
    return %c0_i32 : i32
  }
  func.func @transform_2(%arg0: i32) -> (i32, i32) {
    %c0_i32 = arith.constant 0 : i32
    %c0_i32_0 = arith.constant 0 : i32
    return %arg0, %c0_i32 : i32, i32
  }
  func.func @transform_3(%arg0: i32) -> (i32, i32) {
    %c0_i32 = arith.constant 0 : i32
    %c0_i32_0 = arith.constant 0 : i32
    return %arg0, %c0_i32 : i32, i32
  }
  func.func @transform_4(%arg0: i32) -> (i32, i32) {
    %c0_i32 = arith.constant 0 : i32
    %c0_i32_0 = arith.constant 0 : i32
    return %arg0, %c0_i32 : i32, i32
  }
  func.func @transform_5(%arg0: i32) -> (i32, i32) {
    %c0_i32 = arith.constant 0 : i32
    %c0_i32_0 = arith.constant 0 : i32
    return %arg0, %c0_i32 : i32, i32
  }
}

</mosaic_0001>

<bundles_post_ra>
// kernel: tpu_custom_call.1
= control target key start
LH: loop header
LB: loop body
LE: loop exit
PB: predicated region body
PF: predicated region fallthrough
CT: control target
= control target key end

     0   :  { %s1082_s0 = inlined_call_operand.hbm [shape: f32[3], index: 0, kind: input, shape index: {}]   ;;  %s1083_s1 = inlined_call_operand.hbm [shape: f32[3], index: 1, kind: input, shape index: {}]   ;;  %s1084_s2 = inlined_call_operand.hbm [shape: f32[16,128], index: 2, kind: input, shape index: {}]   ;;  %s1085_s3 = inlined_call_operand.hbm [shape: f32[16,128], index: 3, kind: input, shape index: {}]   ;;  %s1086_s4 = inlined_call_operand.hbm [shape: f32[16,128], index: 4, kind: output, shape index: {0}]   ;;  %s1087_s5 = inlined_call_operand.hbm [shape: f32[16,128], index: 5, kind: output, shape index: {1}]  }
   0x1   :  { %1089 = sst [smem:[#allocation22_spill]] %s1082_s0 }
   0x2   :  { %1090 = sst [smem:[#allocation23_spill]] %s1083_s1 }
   0x3   :  { %11 = vsyncpa [#allocation5], 0 }
   0x4   :  { %12 = vsyncpa [#allocation7], 0 }
   0x5   :  { %13 = vsyncpa [#allocation3], 0 }
   0x6   :  { %15 = vsyncpa [#allocation3 + $0x1], 0 }
   0x7   :  { %16 = vsyncpa [#allocation10], 0 }
   0x8   :  { %18 = vsyncpa [#allocation10 + $0x1], 0 }
   0x9   :  { %19 = vsyncpa [#allocation4], 0 }
   0xa   :  { %21 = vsyncpa [#allocation4 + $0x1], 0 }
   0xb   :  { %22 = vsyncpa [#allocation13], 0 }
   0xc   :  { %24 = vsyncpa [#allocation13 + $0x1], 0  ;;  %s875_s18 = smov 0   ;;  %s877_s19 = smov 0  }
   0xd   :  { %s879_s20 = smov 0   ;;  %s881_s21 = smov 0  }
   0xe LB: > { %1091 = sst [smem:[#allocation20_spill]] %s837_s20  ;;  %s896_s22 = sadd.s32 4294967295, %s841_s21   ;;  %s841_s21 = sphi %s881_s21, %s1105_s21   ;;  %s837_s20 = sphi %s879_s20, %s1102_s20   ;;  %s833_s19 = sphi %s877_s19, %s1104_s19   ;;  %s829_s18 = sphi %s875_s18, %s1103_s18  }
   0xf   : > { %s538_s23 = sadd.s32 4294967294, %s841_s21   ;;  %p92_p0 = scmp.ne.s32.totalorder %s833_s19, %s829_s18 }
  0x10   : > { %p93_p1 = scmp.eq.s32.totalorder %s896_s22, 0  ;;  %p142_p2 = scmp.eq.s32.totalorder %s896_s22, 1 }
  0x11   : > { %p148_p3 = scmp.eq.s32.totalorder %s538_s23, 1  ;;  %p539_p5 = scmp.ge.s32.totalorder %s841_s21, 1 }
  0x12   : > { %p905_p4 = por %p93_p1, %p92_p0  ;;  %p181_p7 = scmp.lt.s32.totalorder %s841_s21, 3 }
  0x13   : > { %p910_p6 = por %p148_p3, %p92_p0  ;;  %s1094_s0 = sld [smem:[#allocation22_spill]] }
  0x14   : > { %p918_p8 = pnand %p539_p5, %p181_p7  ;;  %s1096_s1 = sld [smem:[#allocation23_spill]] }
  0x15   : > { %s931_s8 = sadd.s32 1, %s841_s21   ;;  %s843_s10 = smov [#allocation2]  }
  0x16   : > { %p580_p10 = pneg %p918_p8  ;;  %s76_s9 = ssub.s32 %s841_s21, %s931_s8 }
  0x17   : > { %s844_s11 = smov [#allocation6]   ;;  %p77_p12 = scmp.eq.s32.totalorder %s76_s9, 0 }
  0x18   : > { %p581_p11 = pnand %p580_p10, %p93_p1  ;;  %s79_s12 = sadd.s32 1, %s837_s20 }
  0x19   : > { %s193_s28 = sshll.u32 %s1094_s0, 4  ;;  %p86_p13 = scmp.ne.s32.totalorder %s837_s20, %s833_s19  ;;  %s194_s28 = int_to_ptr.hbm [resolvable:$true] %s193_s28 }
  0x1a   : > { %s203_s7 = sshll.u32 %s1096_s1, 4  ;;  %p87_p0 = scmp.eq.s32.totalorder %s841_s21, 0  ;;  %s204_s7 = int_to_ptr.hbm [resolvable:$true] %s203_s7 }
  0x1b   : > { %583 = dma.hbm_to_smem (!%p581_p11), %s194_s28, 16, %s843_s10, [#allocation5]  }
  0x1c   : > { %586 = dma.hbm_to_smem (!%p581_p11), %s204_s7, 16, %s844_s11, [#allocation7]  }
  0x1d   : > { %s940_s13 = scalar_select %p77_p12, %s837_s20, %s79_s12  }
  0x1e   : > { %p88_p3 = por %p87_p0, %p86_p13  ;;  %p944_p5 = por %p142_p2, %p86_p13 }
  0x1f   : > { %1097 = sst [smem:[#allocation21_spill]] %s940_s13  ;;  %p603_p7 = scmp.lt.s32.totalorder %s841_s21, 2 }
  0x20   : > { %s950_s15 = sand.u32 1, %s837_s20   ;;  %s544_s17 = sshll.u32 %s841_s21, 3 }
  0x21   : > { %s543_s16 = sshll.u32 %s950_s15, 3  ;;  %s222_s27 = scalar_lea.hbm %s1084_s2, %s544_s17 }
  0x22   : > { %s218_s28 = scalar_lea.vmem [#allocation8], %s543_s16  ;;  %s224_s6 = sshll.u32 %s222_s27, 4  ;;  %s225_s6 = int_to_ptr.hbm [resolvable:$true] %s224_s6 }
  0x23   : > { %s226_s30 = sshll.u32 %s218_s28, 4  ;;  %p957_p2 = pnand %p603_p7, %p88_p3  ;;  %s227_s30 = int_to_ptr.vmem [resolvable:$true] %s226_s30 }
  0x24   : > { %s241_s11 = scalar_lea.hbm %s1085_s3, %s544_s17  ;;  %s215_s12 = scalar_lea.sflag [#allocation3], %s950_s15 }
  0x25   : > { %s671_s0 = sshra.s32 %s225_s6, 4  ;;  %p675_p11 = pneg %p957_p2  ;;  %s672_s0 = int_to_ptr.hbm [resolvable:$true] %s671_s0 }
  0x26   : > { %s673_s23 = scalar_lea.hbm %s672_s0, 8  ;;  %s678_s28 = scalar_lea.hbm %s1084_s2, 16 }
  0x27   : > { %p674_p10 = scmp.ne.s32.totalorder %s672_s0, %s673_s23  ;;  %p679_p0 = scmp.lt.s32.totalorder %s672_s0, %s1084_s2 }
  0x28   : > { %p680_p3 = scmp.lt.s32.totalorder %s678_s28, %s673_s23 }
  0x29   : > { %p676_p12 = pnand %p675_p11, %p674_p10 }
  0x2a   : > { %p681_p7 = por %p680_p3, %p679_p0 }
  0x2b   : > { %p677_p13 = pneg %p676_p12 }
  0x2d   : > { %p682_p9 = pnand %p681_p7, %p677_p13 }
  0x2f   : > { %685 = shalt.err (!%p682_p9)
}
  0x30   : > { %590 = dma.hbm_to_vmem [thread:$0]  (!%p957_p2), %s225_s6, 128, %s227_s30, %s215_s12  }
  0x31   : > { %s243_s17 = sshll.u32 %s241_s11, 4  ;;  %s237_s10 = scalar_lea.vmem [#allocation9], %s543_s16  ;;  %s244_s17 = int_to_ptr.hbm [resolvable:$true] %s243_s17 }
  0x32   : > { %s245_s13 = sshll.u32 %s237_s10, 4  ;;  %s234_s26 = scalar_lea.sflag [#allocation10], %s950_s15  ;;  %s246_s13 = int_to_ptr.vmem [resolvable:$true] %s245_s13 }
  0x33   : > { %s701_s27 = sshra.s32 %s244_s17, 4  ;;  %s708_s23 = scalar_lea.hbm %s1085_s3, 16  ;;  %s702_s27 = int_to_ptr.hbm [resolvable:$true] %s701_s27 }
  0x34   : > { %s703_s20 = scalar_lea.hbm %s702_s27, 8  ;;  %p709_p9 = scmp.lt.s32.totalorder %s702_s27, %s1085_s3 }
  0x35   : > { %p704_p10 = scmp.ne.s32.totalorder %s702_s27, %s703_s20  ;;  %p710_p0 = scmp.lt.s32.totalorder %s708_s23, %s703_s20 }
  0x37   : > { %p706_p12 = pnand %p704_p10, %p675_p11  ;;  %p711_p3 = por %p710_p0, %p709_p9 }
  0x39   : > { %p707_p13 = pneg %p706_p12 }
  0x3b   : > { %p712_p7 = pnand %p711_p3, %p707_p13 }
  0x3d   : > { %715 = shalt.err (!%p712_p7)
}
  0x3e   : > { %593 = dma.hbm_to_vmem [thread:$0]  (!%p957_p2), %s244_s17, 128, %s246_s13, %s234_s26  }
  0x3f   : > { %254 = sbr.rel (%p918_p8) target bundleno = 112 (0x70), region = 36 }
  0x44   : > { %804 = dma.done.wait (%p93_p1), [#allocation5], 16  }
  0x45   : > { %806 = vsyncadd (%p93_p1), [#allocation5], 4294967280 }
  0x46   : > { %808 = dma.done.wait (%p93_p1), [#allocation7], 16  }
  0x47   : > { %810 = vsyncadd (%p93_p1), [#allocation7], 4294967280  ;;  %s1001_s20 = sand.u32 1, %s833_s19  }
  0x48   : > { %s1004_s29 = sshll.u32 %s1001_s20, 3  ;;  %s267_s13 = scalar_lea.sflag [#allocation3], %s1001_s20 }
  0x49   : > { %s270_s15 = scalar_lea.vmem [#allocation8], %s1004_s29 }
  0x4a   : > { %812 = dma.done.wait (%p905_p4), %s267_s13, 128  }
  0x4b   : > { %814 = vsyncadd (%p905_p4), %s267_s13, 4294967168  ;;  %s277_s16 = scalar_lea.sflag [#allocation10], %s1001_s20  ;;  %s280_s6 = scalar_lea.vmem [#allocation9], %s1004_s29 }
  0x4c   : > { %816 = dma.done.wait (%p905_p4), %s277_s16, 128  }
  0x4d   : > { %818 = vsyncadd (%p905_p4), %s277_s16, 4294967168 }
  0x4e   : > { %286 = sfence }
  0x4f   : > { %v319_v0 = vld [vmem:[%s270_s15] sm:$0xff]  ;;  %v320_v1 = vld [vmem:[%s280_s6] sm:$0xff]  ;;  %s1018_s7 = sld [smem:[#allocation2]]  ;;  %s560_s26 = sshll.u32 %s896_s22, 3 }
  0x50   : > { %s554_s11 = sld [smem:[#allocation2 + $0x1]]  ;;  %v337_v2 = vmul.f32 %v320_v1, %v320_v1  ;;  %v338_v3 = vmul.f32 %v319_v0, %v319_v0  ;;  %v340_v5 = vmul.f32 %v320_v1, %v319_v0  ;;  %s371_s0 = scalar_lea.hbm %s1086_s4, %s560_s26 }
  0x51   : > { %s555_s12 = sld [smem:[#allocation6 + $0x1]]  ;;  %s385_s22 = scalar_lea.hbm %s1087_s5, %s560_s26 }
  0x52   : > { %s556_s9 = sld [smem:[#allocation2 + $0x2]]  ;;  %v339_v4 = vadd.f32 %v338_v3, %v337_v2  ;;  %s311_s28 = scalar_lea.vmem [#allocation11], %s1004_s29 }
  0x53   : > { %s557_s17 = sld [smem:[#allocation6 + $0x2]]  ;;  %s1029_s30 = sshll.u32 %s311_s28, 4  ;;  %s374_s30 = int_to_ptr.vmem [resolvable:$true] %s1029_s30 }
  0x54   : > { %s323_s10 = sld [smem:[#allocation6]]  ;;  %s318_s13 = scalar_lea.vmem [#allocation12], %s1004_s29 }
  0x55   : > { %v322_v13 = vstv %s1018_s7  ;;  %s1032_s15 = sshll.u32 %s318_s13, 4  ;;  %s375_s16 = sshll.u32 %s371_s0, 4  ;;  %s388_s15 = int_to_ptr.vmem [resolvable:$true] %s1032_s15  ;;  %s376_s16 = int_to_ptr.hbm [resolvable:$true] %s375_s16 }
  0x56   : > { %v326_v6 = vstv %s554_s11  ;;  %s389_s6 = sshll.u32 %s385_s22, 4  ;;  %s356_s29 = scalar_lea.sflag [#allocation4], %s1001_s20  ;;  %s1036_s6 = int_to_ptr.hbm [resolvable:$true] %s389_s6 }
  0x57   : > { %v327_v7 = vmul.f32 %v326_v6, %v319_v0  ;;  %v329_v8 = vstv %s555_s12  ;;  %v333_v9 = vmul.f32 %v326_v6, %v320_v1  ;;  %s745_s7 = sshra.s32 %s376_s16, 4  ;;  %s746_s7 = int_to_ptr.hbm [resolvable:$true] %s745_s7 }
  0x58   : > { %v330_v10 = vmul.f32 %v329_v8, %v320_v1  ;;  %v342_v11 = vstv %s556_s9  ;;  %v334_v12 = vmul.f32 %v329_v8, %v319_v0  ;;  %s747_s11 = scalar_lea.hbm %s746_s7, 8  ;;  %p752_p2 = scmp.lt.s32.totalorder %s746_s7, %s1086_s4 }
  0x59   : > { %v343_v14 = vmul.f32 %v342_v11, %v339_v4  ;;  %v345_v15 = vstv %s557_s17  ;;  %v349_v16 = vmul.f32 %v342_v11, %v340_v5  ;;  %p748_p1 = scmp.ne.s32.totalorder %s746_s7, %s747_s11  ;;  %s751_s17 = scalar_lea.hbm %s1086_s4, 16 }
  0x5a   : > { %v331_v17 = vsub.f32 %v327_v7, %v330_v10  ;;  %v346_v18 = vmul.f32 %v345_v15, %v340_v5  ;;  %v324_v19 = vstv %s323_s10  ;;  %v335_v20 = vadd.f32 %v334_v12, %v333_v9  ;;  %p753_p11 = scmp.lt.s32.totalorder %s751_s17, %s747_s11 }
  0x5b   : > { %v350_v21 = vmul.f32 %v345_v15, %v339_v4  ;;  %p749_p4 = pnand %p748_p1, %p944_p5 }
  0x5c   : > { %v332_v22 = vadd.f32 %v331_v17, %v322_v13  ;;  %v347_v23 = vsub.f32 %v343_v14, %v346_v18  ;;  %v336_v24 = vadd.f32 %v335_v20, %v324_v19  ;;  %p754_p10 = por %p753_p11, %p752_p2 }
  0x5d   : > { %v351_v25 = vadd.f32 %v350_v21, %v349_v16  ;;  %p750_p8 = pneg %p749_p4 }
  0x5e   : > { %v348_v26 = vadd.f32 %v347_v23, %v332_v22 }
  0x5f   : > { %v352_v27 = vadd.f32 %v351_v25, %v336_v24  ;;  %p755_p12 = pnand %p754_p10, %p750_p8 }
  0x60   : > { %353 = vst [vmem:[%s311_s28] sm:$0xff] %v348_v26 }
  0x61   : > { %354 = vst [vmem:[%s318_s13] sm:$0xff] %v352_v27 }
  0x62   : > { %758 = shalt.err (!%p755_p12)
}
  0x63   : > { %576 = dma.vmem_to_hbm [thread:$0]  (%p944_p5), %s374_s30, 128, %s376_s16, %s356_s29  }
  0x64   : > { %s361_s24 = scalar_lea.sflag [#allocation13], %s1001_s20  ;;  %s773_s27 = sshra.s32 %s1036_s6, 4  ;;  %s774_s27 = int_to_ptr.hbm [resolvable:$true] %s773_s27 }
  0x65   : > { %s775_s0 = scalar_lea.hbm %s774_s27, 8  ;;  %s779_s22 = scalar_lea.hbm %s1087_s5, 16 }
  0x66   : > { %p776_p13 = scmp.ne.s32.totalorder %s774_s27, %s775_s0  ;;  %p780_p3 = scmp.lt.s32.totalorder %s774_s27, %s1087_s5 }
  0x67   : > { %p781_p7 = scmp.lt.s32.totalorder %s779_s22, %s775_s0 }
  0x68   : > { %p777_p9 = pnand %p776_p13, %p944_p5 }
  0x69   : > { %p782_p1 = por %p781_p7, %p780_p3 }
  0x6a   : > { %p778_p0 = pneg %p777_p9 }
  0x6c   : > { %p783_p4 = pnand %p782_p1, %p778_p0 }
  0x6e   : > { %786 = shalt.err (!%p783_p4)
}
  0x6f   : > { %577 = dma.vmem_to_hbm [thread:$0]  (%p944_p5), %s388_s15, 128, %s1036_s6, %s361_s24  }
  0x70 PF: > { %s401_s20 = sand.u32 1, %s829_s18   ;;  %p1100_p8 = scmp.ge.s32.totalorder %s841_s21, 2 }
  0x71   : > { %s402_s30 = scalar_lea.sflag [#allocation4], %s401_s20 }
  0x72   : > { %p595_p2 = pnand %p1100_p8, %p910_p6 }
  0x74   : > { %p596_p11 = pneg %p595_p2 }
  0x76   : > { %820 = dma.done.wait (%p596_p11), %s402_s30, 128  }
  0x77   : > { %822 = vsyncadd (%p596_p11), %s402_s30, 4294967168  ;;  %s412_s16 = scalar_lea.sflag [#allocation13], %s401_s20 }
  0x78   : > { %824 = dma.done.wait (%p596_p11), %s412_s16, 128  }
  0x79   : > { %826 = vsyncadd (%p596_p11), %s412_s16, 4294967168  ;;  %s1101_s14 = sld [smem:[#allocation20_spill]]  ;;  %p27_p5 = scmp.ge.s32.totalorder %s931_s8, 4  }
  0x7a   : > { %s1102_s20 = sld [smem:[#allocation21_spill]]  ;;  %s1103_s18 = smov %s833_s19 }
  0x7b   : > { %s1105_s21 = smov %s931_s8  ;;  %29 = sbr.rel (!%p27_p5) target bundleno = 14 (0xe), region = 120 }
  0x7f   : > { %s1104_s19 = smov %s1101_s14 }
  0x80   :  { %418 = vsyncpa [#allocation3], 1 }
  0x81   :  { %420 = vsyncpa [#allocation3 + $0x1], 1 }
  0x82   :  { %421 = vsyncpa [#allocation10], 1 }
  0x83   :  { %423 = vsyncpa [#allocation10 + $0x1], 1 }
  0x84   :  { %424 = vsyncpa [#allocation4], 1 }
  0x85   :  { %426 = vsyncpa [#allocation4 + $0x1], 1 }
  0x86   :  { %427 = vsyncpa [#allocation13], 1 }
  0x87   :  { %429 = vsyncpa [#allocation13 + $0x1], 1 }
  0x88   :  { %430 = vsyncpa [#allocation5], 1 }
  0x89   :  { %432 = vsyncpa [#allocation5 + $0x1], 1 }
  0x8a   :  { %433 = vsyncpa [#allocation7], 1 }

</bundles_post_ra>
